<compile_context>
chip_gen: v7x
topology: tpu7x:2x2x1
jax: 0.10.0
libtpu: 0.0.40
codegen_flags: <defaults>
</compile_context>

<pallas_src>
import copy
import functools

import jax
import jax.numpy as jnp
from jax.experimental import pallas as pl
from jax.experimental.pallas import tpu as pltpu


# In the reference, ACTIVATIONS maps names to torch functions; here we keep the
# name and resolve it to a JAX op inside the kernel body.
ACTIVATIONS = {
    'relu': 'relu', 'sigmoid': 'sigmoid', 'tanh': 'tanh',
    'leaky_relu': 'leaky_relu', 'elu': 'elu', 'selu': 'selu', 'gelu': 'gelu',
}

_TRANSCENDENTAL_ACTS = frozenset({'sigmoid', 'tanh', 'elu', 'selu', 'gelu'})

_LANE = 128      # pad every feature dim to a multiple of the lane width
_SUBLANE = 16    # pad N / M to a multiple of the bf16 sublane packing


def layer_build_args(node_dim, edge_dim, n_classes, layer_params):
    """Generator of layer arguments (ported verbatim from the reference)."""
    if isinstance(layer_params['n_units'], list):
        for v in layer_params.values():
            assert isinstance(v, list), 'Expected list because n_units is specified as list!'
            assert len(v) == len(layer_params['n_units']), 'Expected same number of elements in lists!'
        params = copy.deepcopy(layer_params)
        n_layers = len(layer_params['n_units'])
    else:
        params = dict()
        n_layers = layer_params['n_hidden_layers']
        for k, v in layer_params.items():
            if k != 'n_hidden_layers':
                params[k] = [layer_params[k]] * n_layers
    n_units = params.pop('n_units')
    activations = params.pop('activation')
    kwargs = [dict(zip(params, t)) for t in zip(*params.values())]
    if len(kwargs) == 0:
        kwargs = [{}] * n_layers
    if n_layers == 0:
        yield (node_dim, edge_dim, n_classes, None, {k: None for k in params.keys()})
    else:
        yield (node_dim, edge_dim, n_units[0], ACTIVATIONS[activations[0]], kwargs[0])
        for i in range(n_layers - 1):
            yield (n_units[i], edge_dim, n_units[i + 1], ACTIVATIONS[activations[i + 1]], kwargs[i])
        yield (n_units[-1], edge_dim, n_classes, None, kwargs[-1])


def _round_up(x, m):
    return ((x + m - 1) // m) * m


def _pad2d(x, shape):
    """Zero-pad a 2-D array up to `shape`."""
    pads = [(0, t - s) for s, t in zip(x.shape, shape)]
    return jnp.pad(x, pads)


def _apply_act(name, x):
    """Activation in f32 (safe on v5e: no bf16 VPU/EUP)."""
    if name is None:
        return x
    if name == 'relu':
        return jnp.maximum(x, 0.0)
    if name == 'sigmoid':
        return jax.nn.sigmoid(x)
    if name == 'tanh':
        return jnp.tanh(x)
    if name == 'leaky_relu':
        return jnp.where(x >= 0, x, 0.01 * x)
    if name == 'elu':
        return jnp.where(x >= 0, x, jnp.expm1(x))
    if name == 'selu':
        return jax.nn.selu(x)
    if name == 'gelu':
        return jax.nn.gelu(x, approximate=False)
    raise ValueError(f'unknown activation {name}')


def fused_stack_kernel(acts, n_layers,
                       h_ref, e_ref, adj_ref, inc_ref, w_ref, b_ref, out_ref):
    """One kernel running the whole edGNN layer stack.

    h_ref   : (Np, D)        bf16 padded node features
    e_ref   : (Mp, D)        bf16 padded edge features
    adj_ref : (Np, Np)       bf16 dense adjacency (dst x src, edge multiplicity)
    inc_ref : (Np, Mp)       bf16 dense incidence (dst x edge)
    w_ref   : (L, 3*D, D)    bf16 packed [W_self; W_nbr; W_edge] per layer
    b_ref   : (L, 1, D)      f32  packed bias per layer
    out_ref : (Np, D)        f32  padded logits
    """
    d = h_ref.shape[1]

    adj = adj_ref[...]                                             # (Np, Np) bf16
    # Edge aggregation is independent of the layer index -> compute once.
    agg_e = jnp.dot(inc_ref[...], e_ref[...],
                    preferred_element_type=jnp.float32).astype(jnp.bfloat16)

    h = h_ref[...]                                                 # bf16 carry
    h_f32 = h.astype(jnp.float32)

    for layer_idx in range(n_layers):
        # Neighbor aggregation on the MXU (bf16 in, f32 accumulate).
        agg_n = jnp.dot(adj, h,
                        preferred_element_type=jnp.float32).astype(jnp.bfloat16)

        w_l = w_ref[layer_idx]                                     # (3*D, D) bf16
        # Three accumulated dots + broadcast bias add (no lane-axis concat,
        # no ones column).  Slice offsets are static and 128-aligned.
        z = jnp.dot(h, w_l[0:d, :], preferred_element_type=jnp.float32)
        z = z + jnp.dot(agg_n, w_l[d:2 * d, :],
                        preferred_element_type=jnp.float32)
        z = z + jnp.dot(agg_e, w_l[2 * d:3 * d, :],
                        preferred_element_type=jnp.float32)
        z = z + b_ref[layer_idx]                                   # (1, D) f32

        h_f32 = _apply_act(acts[layer_idx], z)                     # f32 math
        if layer_idx + 1 < n_layers:
            h = h_f32.astype(jnp.bfloat16)                         # bf16 carry

    out_ref[...] = h_f32                                           # lane-dense store


def fused_edgnn_forward(h0, e, adj, inc, w_all, b_all, acts):
    """Run the full layer stack in a single (grid-less) pallas_call."""
    n_pad, d_pad = h0.shape
    m_pad = e.shape[0]
    n_layers = int(w_all.shape[0])

    # Advisory cost estimate for the XLA scheduler.
    flops = 2 * n_pad * m_pad * d_pad                      # inc @ E (once)
    transcendentals = 0
    for act in acts:
        flops += 2 * n_pad * n_pad * d_pad                 # adj @ h
        flops += 3 * 2 * n_pad * d_pad * d_pad             # three projection dots
        if act in _TRANSCENDENTAL_ACTS:
            transcendentals += n_pad * d_pad

    operands = (h0, e, adj, inc, w_all, b_all)
    bytes_accessed = (sum(int(x.size) * x.dtype.itemsize for x in operands)
                      + n_pad * d_pad * 4)

    return pl.pallas_call(
        functools.partial(fused_stack_kernel, tuple(acts), n_layers),
        out_shape=jax.ShapeDtypeStruct((n_pad, d_pad), jnp.float32),
        # No grid / BlockSpecs: whole padded arrays are resident in VMEM once,
        # so there is no pipeline and no double-buffering to pay for.
        compiler_params=pltpu.CompilerParams(
            # TODO(synk): re-derive per generation when tiling for big graphs.
            vmem_limit_bytes=32 * 1024 * 1024),
        cost_estimate=pl.CostEstimate(
            flops=flops,
            transcendentals=transcendentals,
            bytes_accessed=bytes_accessed),
    )(*operands)


class PallasEdGNNModel:
    """JAX/Pallas counterpart of the PyTorch `Model` (stack of edGNN layers)."""

    def __init__(self, config_params, n_classes, key):
        self.config_params = config_params
        self.n_classes = n_classes

        layer_args = list(layer_build_args(config_params['node_dim'],
                                           config_params['edge_dim'],
                                           n_classes,
                                           config_params['layer_params']))

        # Common padded feature width for the whole stack (lane-dense).
        all_dims = [config_params['edge_dim']]
        for node_dim, edge_dim, n_out, _act, _kwargs in layer_args:
            all_dims += [node_dim, edge_dim, n_out]
        self.d_pad = _round_up(max(all_dims), _LANE)

        w_blocks, b_blocks, acts = [], [], []
        for node_dim, edge_dim, n_out, act, _kwargs in layer_args:
            # TODO(synk): per-layer kwargs (dropout/batchnorm/...) are dropped.
            key, k1, k2, k3, k4 = jax.random.split(key, 5)
            fan_in = 2 * node_dim + edge_dim
            scale = 1.0 / float(fan_in) ** 0.5
            w_self = jax.random.uniform(k1, (node_dim, n_out), jnp.float32, -scale, scale)
            w_nbr = jax.random.uniform(k2, (node_dim, n_out), jnp.float32, -scale, scale)
            w_edge = jax.random.uniform(k3, (edge_dim, n_out), jnp.float32, -scale, scale)
            bias = jax.random.uniform(k4, (n_out,), jnp.float32, -scale, scale)

            w_l = jnp.concatenate([
                _pad2d(w_self, (self.d_pad, self.d_pad)),
                _pad2d(w_nbr, (self.d_pad, self.d_pad)),
                _pad2d(w_edge, (self.d_pad, self.d_pad)),
            ], axis=0)                                      # (3*d_pad, d_pad)
            w_blocks.append(w_l.astype(jnp.bfloat16))
            b_blocks.append(_pad2d(bias.reshape(1, n_out), (1, self.d_pad)))
            acts.append(act)

        # ONE packed weight operand + ONE packed bias operand for all layers.
        self.w_all = jnp.stack(w_blocks)          # (L, 3*d_pad, d_pad) bf16
        self.b_all = jnp.stack(b_blocks)          # (L, 1, d_pad)       f32
        self.acts = acts

    def forward(self, node_features, edge_features, adj, inc):
        n_nodes = node_features.shape[0]
        n_edges = edge_features.shape[0]
        n_pad = _round_up(max(n_nodes, _SUBLANE), _SUBLANE)
        m_pad = _round_up(max(n_edges, _SUBLANE), _SUBLANE)

        h0 = _pad2d(node_features, (n_pad, self.d_pad)).astype(jnp.bfloat16)
        e = _pad2d(edge_features, (m_pad, self.d_pad)).astype(jnp.bfloat16)
        adj_p = _pad2d(adj, (n_pad, n_pad)).astype(jnp.bfloat16)
        inc_p = _pad2d(inc, (n_pad, m_pad)).astype(jnp.bfloat16)

        out_padded = fused_edgnn_forward(h0, e, adj_p, inc_p,
                                         self.w_all, self.b_all, self.acts)
        # Slice the valid (unpadded) block outside the kernel.
        return out_padded[:n_nodes, :self.n_classes]


if __name__ == "__main__":
    key = jax.random.PRNGKey(0)

    # Small synthetic graph.
    n_nodes, n_edges = 8, 16
    node_dim, edge_dim, n_classes = 8, 4, 4

    key, k_nf, k_ef, k_src, k_dst, k_params = jax.random.split(key, 6)
    node_features = jax.random.normal(k_nf, (n_nodes, node_dim), jnp.float32)
    edge_features = jax.random.normal(k_ef, (n_edges, edge_dim), jnp.float32)
    src = jax.random.randint(k_src, (n_edges,), 0, n_nodes)
    dst = jax.random.randint(k_dst, (n_edges,), 0, n_nodes)

    # Dense adjacency (dst x src, edge multiplicity) and edge-incidence (dst x edge).
    adj = jnp.zeros((n_nodes, n_nodes), jnp.float32).at[dst, src].add(1.0)
    inc = jnp.zeros((n_nodes, n_edges), jnp.float32).at[dst, jnp.arange(n_edges)].set(1.0)

    config_params = {
        'node_dim': node_dim,
        'edge_dim': edge_dim,
        'layer_params': {
            'n_units': [16, 16],
            'activation': ['relu', 'relu'],
        },
    }

    model = PallasEdGNNModel(config_params, n_classes=n_classes, key=k_params)
    logits = model.forward(node_features, edge_features, adj, inc)
    logits = jax.block_until_ready(logits)
    assert logits.shape == (n_nodes, n_classes)
    assert jnp.all(jnp.isfinite(logits))
    print("KERNEL_OK")
</pallas_src>

<mosaic_0001>
module attributes {stable_mosaic.version = 11 : i64} {
  func.func @fused_stack_kernel(%arg0: memref<16x128xbf16, #tpu.memory_space<vmem>>, %arg1: memref<16x128xbf16, #tpu.memory_space<vmem>>, %arg2: memref<16x16xbf16, #tpu.memory_space<vmem>>, %arg3: memref<16x16xbf16, #tpu.memory_space<vmem>>, %arg4: memref<3x384x128xbf16, #tpu.memory_space<vmem>>, %arg5: memref<3x1x128xf32, #tpu.memory_space<vmem>>, %arg6: memref<16x128xf32, #tpu.memory_space<vmem>>) attributes {dimension_semantics = [], scalar_prefetch = 0 : i64, scratch_operands = 0 : i64, tpu.core_type = #tpu.core_type<tc>} {
    %c0 = arith.constant 0 : index
    %c0_0 = arith.constant 0 : index
    %0 = vector.load %arg2[%c0, %c0_0] : memref<16x16xbf16, #tpu.memory_space<vmem>>, vector<16x16xbf16>
    %c0_1 = arith.constant 0 : index
    %c0_2 = arith.constant 0 : index
    %1 = vector.load %arg3[%c0_1, %c0_2] : memref<16x16xbf16, #tpu.memory_space<vmem>>, vector<16x16xbf16>
    %c0_3 = arith.constant 0 : index
    %c0_4 = arith.constant 0 : index
    %2 = vector.load %arg1[%c0_3, %c0_4] : memref<16x128xbf16, #tpu.memory_space<vmem>>, vector<16x128xbf16>
    %cst = arith.constant dense<0.000000e+00> : vector<16x128xf32>
    %3 = tpu.matmul %1, %2, %cst {dimension_numbers = #tpu.dot_dimension_numbers<[1], [0], [0], [1], [0, 0, 1, 1], [], []>} : vector<16x16xbf16>, vector<16x128xbf16>, vector<16x128xf32> -> vector<16x128xf32>
    %4 = arith.truncf %3 : vector<16x128xf32> to vector<16x128xbf16>
    %c0_5 = arith.constant 0 : index
    %c0_6 = arith.constant 0 : index
    %5 = vector.load %arg0[%c0_5, %c0_6] : memref<16x128xbf16, #tpu.memory_space<vmem>>, vector<16x128xbf16>
    %cst_7 = arith.constant dense<0.000000e+00> : vector<16x128xf32>
    %6 = tpu.matmul %0, %5, %cst_7 {dimension_numbers = #tpu.dot_dimension_numbers<[1], [0], [0], [1], [0, 0, 1, 1], [], []>} : vector<16x16xbf16>, vector<16x128xbf16>, vector<16x128xf32> -> vector<16x128xf32>
    %7 = arith.truncf %6 : vector<16x128xf32> to vector<16x128xbf16>
    %c0_8 = arith.constant 0 : index
    %c0_9 = arith.constant 0 : index
    %c0_10 = arith.constant 0 : index
    %8 = vector.load %arg4[%c0_8, %c0_9, %c0_10] : memref<3x384x128xbf16, #tpu.memory_space<vmem>>, vector<1x384x128xbf16>
    %9 = vector.shape_cast %8 : vector<1x384x128xbf16> to vector<384x128xbf16>
    %10 = vector.extract_strided_slice %9 {offsets = [0, 0], sizes = [128, 128], strides = [1, 1]} : vector<384x128xbf16> to vector<128x128xbf16>
    %cst_11 = arith.constant dense<0.000000e+00> : vector<16x128xf32>
    %11 = tpu.matmul %5, %10, %cst_11 {dimension_numbers = #tpu.dot_dimension_numbers<[1], [0], [0], [1], [0, 0, 1, 1], [], []>} : vector<16x128xbf16>, vector<128x128xbf16>, vector<16x128xf32> -> vector<16x128xf32>
    %12 = vector.extract_strided_slice %9 {offsets = [128, 0], sizes = [128, 128], strides = [1, 1]} : vector<384x128xbf16> to vector<128x128xbf16>
    %cst_12 = arith.constant dense<0.000000e+00> : vector<16x128xf32>
    %13 = tpu.matmul %7, %12, %cst_12 {dimension_numbers = #tpu.dot_dimension_numbers<[1], [0], [0], [1], [0, 0, 1, 1], [], []>} : vector<16x128xbf16>, vector<128x128xbf16>, vector<16x128xf32> -> vector<16x128xf32>
    %14 = arith.addf %11, %13 : vector<16x128xf32>
    %15 = vector.extract_strided_slice %9 {offsets = [256, 0], sizes = [128, 128], strides = [1, 1]} : vector<384x128xbf16> to vector<128x128xbf16>
    %cst_13 = arith.constant dense<0.000000e+00> : vector<16x128xf32>
    %16 = tpu.matmul %4, %15, %cst_13 {dimension_numbers = #tpu.dot_dimension_numbers<[1], [0], [0], [1], [0, 0, 1, 1], [], []>} : vector<16x128xbf16>, vector<128x128xbf16>, vector<16x128xf32> -> vector<16x128xf32>
    %17 = arith.addf %14, %16 : vector<16x128xf32>
    %c0_14 = arith.constant 0 : index
    %c0_15 = arith.constant 0 : index
    %c0_16 = arith.constant 0 : index
    %18 = vector.load %arg5[%c0_14, %c0_15, %c0_16] : memref<3x1x128xf32, #tpu.memory_space<vmem>>, vector<1x1x128xf32>
    %19 = vector.shape_cast %18 : vector<1x1x128xf32> to vector<1x128xf32>
    %20 = vector.broadcast %19 : vector<1x128xf32> to vector<16x128xf32>
    %21 = arith.addf %17, %20 : vector<16x128xf32>
    %cst_17 = arith.constant 0.000000e+00 : f32
    %22 = vector.broadcast %cst_17 : f32 to vector<16x128xf32>
    %23 = arith.maximumf %21, %22 : vector<16x128xf32>
    %24 = arith.truncf %23 : vector<16x128xf32> to vector<16x128xbf16>
    %cst_18 = arith.constant dense<0.000000e+00> : vector<16x128xf32>
    %25 = tpu.matmul %0, %24, %cst_18 {dimension_numbers = #tpu.dot_dimension_numbers<[1], [0], [0], [1], [0, 0, 1, 1], [], []>} : vector<16x16xbf16>, vector<16x128xbf16>, vector<16x128xf32> -> vector<16x128xf32>
    %26 = arith.truncf %25 : vector<16x128xf32> to vector<16x128xbf16>
    %c1 = arith.constant 1 : index
    %c0_19 = arith.constant 0 : index
    %c0_20 = arith.constant 0 : index
    %27 = vector.load %arg4[%c1, %c0_19, %c0_20] : memref<3x384x128xbf16, #tpu.memory_space<vmem>>, vector<1x384x128xbf16>
    %28 = vector.shape_cast %27 : vector<1x384x128xbf16> to vector<384x128xbf16>
    %29 = vector.extract_strided_slice %28 {offsets = [0, 0], sizes = [128, 128], strides = [1, 1]} : vector<384x128xbf16> to vector<128x128xbf16>
    %cst_21 = arith.constant dense<0.000000e+00> : vector<16x128xf32>
    %30 = tpu.matmul %24, %29, %cst_21 {dimension_numbers = #tpu.dot_dimension_numbers<[1], [0], [0], [1], [0, 0, 1, 1], [], []>} : vector<16x128xbf16>, vector<128x128xbf16>, vector<16x128xf32> -> vector<16x128xf32>
    %31 = vector.extract_strided_slice %28 {offsets = [128, 0], sizes = [128, 128], strides = [1, 1]} : vector<384x128xbf16> to vector<128x128xbf16>
    %cst_22 = arith.constant dense<0.000000e+00> : vector<16x128xf32>
    %32 = tpu.matmul %26, %31, %cst_22 {dimension_numbers = #tpu.dot_dimension_numbers<[1], [0], [0], [1], [0, 0, 1, 1], [], []>} : vector<16x128xbf16>, vector<128x128xbf16>, vector<16x128xf32> -> vector<16x128xf32>
    %33 = arith.addf %30, %32 : vector<16x128xf32>
    %34 = vector.extract_strided_slice %28 {offsets = [256, 0], sizes = [128, 128], strides = [1, 1]} : vector<384x128xbf16> to vector<128x128xbf16>
    %cst_23 = arith.constant dense<0.000000e+00> : vector<16x128xf32>
    %35 = tpu.matmul %4, %34, %cst_23 {dimension_numbers = #tpu.dot_dimension_numbers<[1], [0], [0], [1], [0, 0, 1, 1], [], []>} : vector<16x128xbf16>, vector<128x128xbf16>, vector<16x128xf32> -> vector<16x128xf32>
    %36 = arith.addf %33, %35 : vector<16x128xf32>
    %c1_24 = arith.constant 1 : index
    %c0_25 = arith.constant 0 : index
    %c0_26 = arith.constant 0 : index
    %37 = vector.load %arg5[%c1_24, %c0_25, %c0_26] : memref<3x1x128xf32, #tpu.memory_space<vmem>>, vector<1x1x128xf32>
    %38 = vector.shape_cast %37 : vector<1x1x128xf32> to vector<1x128xf32>
    %39 = vector.broadcast %38 : vector<1x128xf32> to vector<16x128xf32>
    %40 = arith.addf %36, %39 : vector<16x128xf32>
    %cst_27 = arith.constant 0.000000e+00 : f32
    %41 = vector.broadcast %cst_27 : f32 to vector<16x128xf32>
    %42 = arith.maximumf %40, %41 : vector<16x128xf32>
    %43 = arith.truncf %42 : vector<16x128xf32> to vector<16x128xbf16>
    %cst_28 = arith.constant dense<0.000000e+00> : vector<16x128xf32>
    %44 = tpu.matmul %0, %43, %cst_28 {dimension_numbers = #tpu.dot_dimension_numbers<[1], [0], [0], [1], [0, 0, 1, 1], [], []>} : vector<16x16xbf16>, vector<16x128xbf16>, vector<16x128xf32> -> vector<16x128xf32>
    %45 = arith.truncf %44 : vector<16x128xf32> to vector<16x128xbf16>
    %c2 = arith.constant 2 : index
    %c0_29 = arith.constant 0 : index
    %c0_30 = arith.constant 0 : index
    %46 = vector.load %arg4[%c2, %c0_29, %c0_30] : memref<3x384x128xbf16, #tpu.memory_space<vmem>>, vector<1x384x128xbf16>
    %47 = vector.shape_cast %46 : vector<1x384x128xbf16> to vector<384x128xbf16>
    %48 = vector.extract_strided_slice %47 {offsets = [0, 0], sizes = [128, 128], strides = [1, 1]} : vector<384x128xbf16> to vector<128x128xbf16>
    %cst_31 = arith.constant dense<0.000000e+00> : vector<16x128xf32>
    %49 = tpu.matmul %43, %48, %cst_31 {dimension_numbers = #tpu.dot_dimension_numbers<[1], [0], [0], [1], [0, 0, 1, 1], [], []>} : vector<16x128xbf16>, vector<128x128xbf16>, vector<16x128xf32> -> vector<16x128xf32>
    %50 = vector.extract_strided_slice %47 {offsets = [128, 0], sizes = [128, 128], strides = [1, 1]} : vector<384x128xbf16> to vector<128x128xbf16>
    %cst_32 = arith.constant dense<0.000000e+00> : vector<16x128xf32>
    %51 = tpu.matmul %45, %50, %cst_32 {dimension_numbers = #tpu.dot_dimension_numbers<[1], [0], [0], [1], [0, 0, 1, 1], [], []>} : vector<16x128xbf16>, vector<128x128xbf16>, vector<16x128xf32> -> vector<16x128xf32>
    %52 = arith.addf %49, %51 : vector<16x128xf32>
    %53 = vector.extract_strided_slice %47 {offsets = [256, 0], sizes = [128, 128], strides = [1, 1]} : vector<384x128xbf16> to vector<128x128xbf16>
    %cst_33 = arith.constant dense<0.000000e+00> : vector<16x128xf32>
    %54 = tpu.matmul %4, %53, %cst_33 {dimension_numbers = #tpu.dot_dimension_numbers<[1], [0], [0], [1], [0, 0, 1, 1], [], []>} : vector<16x128xbf16>, vector<128x128xbf16>, vector<16x128xf32> -> vector<16x128xf32>
    %55 = arith.addf %52, %54 : vector<16x128xf32>
    %c2_34 = arith.constant 2 : index
    %c0_35 = arith.constant 0 : index
    %c0_36 = arith.constant 0 : index
    %56 = vector.load %arg5[%c2_34, %c0_35, %c0_36] : memref<3x1x128xf32, #tpu.memory_space<vmem>>, vector<1x1x128xf32>
    %57 = vector.shape_cast %56 : vector<1x1x128xf32> to vector<1x128xf32>
    %58 = vector.broadcast %57 : vector<1x128xf32> to vector<16x128xf32>
    %59 = arith.addf %55, %58 : vector<16x128xf32>
    %c0_37 = arith.constant 0 : index
    %c0_38 = arith.constant 0 : index
    %60 = vector.load %arg6[%c0_37, %c0_38] : memref<16x128xf32, #tpu.memory_space<vmem>>, vector<16x128xf32>
    tpu.vector_store %arg6[%c0_37, %c0_38], %59 {strides = array<i32>} : memref<16x128xf32, #tpu.memory_space<vmem>>, vector<16x128xf32>,
    return
  }
}

</mosaic_0001>

<bundles_post_ra>
// kernel: tpu_custom_call.1
= control target key start
LH: loop header
LB: loop body
LE: loop exit
PB: predicated region body
PF: predicated region fallthrough
CT: control target
= control target key end

     0   :  { %11 = vsyncpa [#allocation3], 0  ;;  %s2137_s0 = inlined_call_operand.hbm [shape: bf16[16,128], index: 0, kind: input, shape index: {}]   ;;  %s2138_s1 = inlined_call_operand.hbm [shape: bf16[16,128], index: 1, kind: input, shape index: {}]   ;;  %s2139_s2 = inlined_call_operand.hbm [shape: bf16[16,16], index: 2, kind: input, shape index: {}]   ;;  %s2140_s3 = inlined_call_operand.vmem [shape: bf16[16,16], index: 3, kind: input, shape index: {}]   ;;  %s2141_s4 = inlined_call_operand.hbm [shape: bf16[3,384,128], index: 4, kind: input, shape index: {}]   ;;  %s2142_s5 = inlined_call_operand.vmem [shape: f32[3,1,128], index: 5, kind: input, shape index: {}]   ;;  %s2143_s6 = inlined_call_operand.hbm [shape: f32[16,128], index: 6, kind: output, shape index: {}]  }
   0x1   :  { %12 = vsyncpa [#allocation6], 0 }
   0x2   :  { %13 = vsyncpa [#allocation9], 0 }
   0x3   :  { %14 = vsyncpa [#allocation4], 0  ;;  %s1877_s21 = smov [#allocation5]   ;;  %s1878_s23 = smov [#allocation2]  }
   0x4   :  { %s32_s22 = sshll.u32 %s1877_s21, 4  ;;  %s20_s24 = sshll.u32 %s1878_s23, 4  ;;  %s33_s22 = int_to_ptr.vmem [resolvable:$true] %s32_s22  ;;  %s1923_s24 = int_to_ptr.vmem [resolvable:$true] %s20_s24 }
   0x5   :  { %s1759_s27 = scalar_lea.hbm %s2138_s1, 128 }
   0x6   :  { %p1760_p0 = scmp.ne.s32.totalorder %s2138_s1, %s1759_s27  ;;  %p1763_p1 = scmp.lt.u32.totalorder %s1759_s27, %s2138_s1 }
   0x8   :  { %p1765_p2 = pnand %p1763_p1, %p1760_p0 }
   0xa   :  { %1768 = shalt.err (!%p1765_p2)
}
   0xb   :  { %s1769_s8 = scalar_lea.vmem %s33_s22, 128  ;;  %p1774_p4 = scmp.lt.s32.totalorder %s33_s22, %s33_s22 }
   0xc   :  { %p1770_p3 = scmp.ne.s32.totalorder %s33_s22, %s1769_s8  ;;  %p1775_p5 = scmp.lt.s32.totalorder %s1769_s8, %s1769_s8 }
   0xe   :  { %p1776_p6 = por %p1775_p5, %p1774_p4 }
  0x10   :  { %p1777_p7 = pnand %p1776_p6, %p1770_p3 }
  0x12   :  { %1780 = shalt.err (!%p1777_p7)
}
  0x13   :  { %s1879_s9 = smov 64   ;;  %s1880_s10 = smov 4  }
  0x14   :  { %38 = dma.hbm_to_vmem [thread:$0]  %s2138_s1, 128, %s33_s22, [#allocation6], %s1879_s9, %s1879_s9, %s1880_s10  }
  0x15   :  { %s1781_s15 = scalar_lea.hbm %s2137_s0, 128 }
  0x16   :  { %p1782_p8 = scmp.ne.s32.totalorder %s2137_s0, %s1781_s15  ;;  %p1785_p9 = scmp.lt.u32.totalorder %s1781_s15, %s2137_s0 }
  0x18   :  { %p1787_p10 = pnand %p1785_p9, %p1782_p8 }
  0x1a   :  { %1790 = shalt.err (!%p1787_p10)
}
  0x1b   :  { %s1791_s20 = scalar_lea.vmem %s1923_s24, 128  ;;  %p1796_p12 = scmp.lt.s32.totalorder %s1923_s24, %s1923_s24 }
  0x1c   :  { %p1792_p11 = scmp.ne.s32.totalorder %s1923_s24, %s1791_s20  ;;  %p1797_p13 = scmp.lt.s32.totalorder %s1791_s20, %s1791_s20 }
  0x1e   :  { %p1798_p0 = por %p1797_p13, %p1796_p12 }
  0x20   :  { %p1799_p1 = pnand %p1798_p0, %p1792_p11 }
  0x22   :  { %1802 = shalt.err (!%p1799_p1)
}
  0x23   :  { %26 = dma.hbm_to_vmem [thread:$0]  %s2137_s0, 128, %s1923_s24, [#allocation3], %s1879_s9, %s1879_s9, %s1880_s10  }
  0x24   :  { %s1881_s22 = smov [#allocation7]   ;;  %s1882_s25 = smov [#allocation8]  }
  0x25   :  { %s44_s23 = sshll.u32 %s1881_s22, 4  ;;  %s58_s26 = sshll.u32 %s1882_s25, 4  ;;  %s45_s23 = int_to_ptr.vmem [resolvable:$true] %s44_s23  ;;  %s1960_s26 = int_to_ptr.vmem [resolvable:$true] %s58_s26 }
  0x26   :  { %s1803_s29 = scalar_lea.hbm %s2139_s2, 128 }
  0x27   :  { %p1804_p2 = scmp.ne.s32.totalorder %s2139_s2, %s1803_s29  ;;  %p1807_p3 = scmp.lt.u32.totalorder %s1803_s29, %s2139_s2 }
  0x29   :  { %p1809_p4 = pnand %p1807_p3, %p1804_p2 }
  0x2b   :  { %1812 = shalt.err (!%p1809_p4)
}
  0x2c   :  { %s1813_s0 = scalar_lea.vmem %s45_s23, 128  ;;  %p1818_p6 = scmp.lt.s32.totalorder %s45_s23, %s45_s23 }
  0x2d   :  { %p1814_p5 = scmp.ne.s32.totalorder %s45_s23, %s1813_s0  ;;  %p1819_p7 = scmp.lt.s32.totalorder %s1813_s0, %s1813_s0 }
  0x2f   :  { %p1820_p8 = por %p1819_p7, %p1818_p6 }
  0x31   :  { %p1821_p9 = pnand %p1820_p8, %p1814_p5 }
  0x33   :  { %1824 = shalt.err (!%p1821_p9)
}
  0x34   :  { %50 = dma.hbm_to_vmem [thread:$0]  %s2139_s2, 128, %s45_s23, [#allocation6], %s1879_s9, %s1879_s9, %s1880_s10  }
  0x35   :  { %s1825_s15 = scalar_lea.hbm %s2141_s4, 9216 }
  0x36   :  { %p1826_p10 = scmp.ne.s32.totalorder %s2141_s4, %s1825_s15  ;;  %p1829_p11 = scmp.lt.u32.totalorder %s1825_s15, %s2141_s4 }
  0x38   :  { %p1831_p12 = pnand %p1829_p11, %p1826_p10 }
  0x3a   :  { %1834 = shalt.err (!%p1831_p12)
}
  0x3b   :  { %s1835_s20 = scalar_lea.vmem %s1960_s26, 9216  ;;  %p1840_p0 = scmp.lt.s32.totalorder %s1960_s26, %s1960_s26 }
  0x3c   :  { %p1836_p13 = scmp.ne.s32.totalorder %s1960_s26, %s1835_s20  ;;  %p1841_p1 = scmp.lt.s32.totalorder %s1835_s20, %s1835_s20 }
  0x3e   :  { %p1842_p2 = por %p1841_p1, %p1840_p0 }
  0x40   :  { %p1843_p3 = pnand %p1842_p2, %p1836_p13 }
  0x42   :  { %1846 = shalt.err (!%p1843_p3)
}
  0x43   :  { %64 = dma.hbm_to_vmem [thread:$0]  %s2141_s4, 9216, %s1960_s26, [#allocation9], %s1879_s9, %s1879_s9, %s1880_s10  }
  0x44   :  { %1869 = dma.done.wait [#allocation3], 128  }
  0x45   :  { %1870 = vsyncadd [#allocation3], 4294967168 }
  0x46   :  { %1871 = dma.done.wait [#allocation6], 256  }
  0x47   :  { %1872 = vsyncadd [#allocation6], 4294967040 }
  0x48   :  { %1873 = dma.done.wait [#allocation9], 9216  }
  0x49   :  { %1874 = vsyncadd [#allocation9], 4294958080  ;;  %v1883_v0 = vmov 0.0   ;;  %vm1884_vm0 = vmmov 0   ;;  %v1683_v1 = vld [vmem:[#allocation5] sm:$0xff]   ;;  %v1684_v2 = vld [vmem:[%s2140_s3] sm:$0xff]  }
  0x4a   :  { %1468 = vmatprep.subr.bf16.mxu1 %v1883_v0  ;;  %1470 = vmatprep.mubr.msk.bf16.mxu1 %vm1884_vm0, %v1883_v0  ;;  %vm97_vm1 = vcmask 130048   ;;  %v1685_v3 = vld [vmem:[#allocation2] sm:$0xff]   ;;  %v1687_v4 = vld [vmem:[#allocation8 + $0x40] sm:$0xff]   ;;  %v2012_v6 = vld [vmem:[#allocation7] sm:$0xff]   ;;  %s1885_s26 = smov [#allocation10]  }
  0x4b   :  { %1480 = vmatprep.subr.bf16.mxu0 %v1883_v0  ;;  %1496 = vmatprep.mubr.msk.bf16.mxu0 %vm1884_vm0, %v1883_v0  ;;  %v1689_v5 = vld [vmem:[#allocation8 + $0x48] sm:$0xff]   ;;  %v1688_v7 = vld [vmem:[#allocation8] sm:$0xff]   ;;  %v1691_v8 = vld [vmem:[#allocation8 + $0x50] sm:$0xff]   ;;  %s1280_s27 = sshll.u32 %s1885_s26, 4  ;;  %s1281_s27 = int_to_ptr.vmem [resolvable:$true] %s1280_s27 }
  0x4c   :  { %1469 = vmatpush3.bf16.msra.mxu1 %v1683_v1  ;;  %1481 = vmatpush3.bf16.msra.mxu0 %v1687_v4  ;;  %v1690_v9 = vld [vmem:[#allocation8 + $0x8] sm:$0xff]   ;;  %v1693_v10 = vld [vmem:[#allocation8 + $0x58] sm:$0xff]   ;;  %v1692_v11 = vld [vmem:[#allocation8 + $0x10] sm:$0xff]   ;;  %s1847_s28 = scalar_lea.vmem %s1281_s27, 256  ;;  %p1852_p5 = scmp.lt.s32.totalorder %s1281_s27, %s1281_s27 }
  0x4d   :  { %1474 = vmatprep.subr.bf16.mxu1 %v1883_v0  ;;  %1482 = vmatprep.subr.bf16.mxu0 %v1883_v0  ;;  %v1695_v12 = vld [vmem:[#allocation8 + $0x60] sm:$0xff]   ;;  %v1694_v13 = vld [vmem:[#allocation8 + $0x18] sm:$0xff]   ;;  %v1697_v15 = vld [vmem:[#allocation8 + $0x68] sm:$0xff]   ;;  %p1848_p4 = scmp.ne.s32.totalorder %s1281_s27, %s1847_s28  ;;  %p1853_p6 = scmp.lt.s32.totalorder %s1847_s28, %s1847_s28 }
  0x4e   :  { %v1696_v14 = vld [vmem:[#allocation8 + $0x20] sm:$0xff]   ;;  %v1698_v16 = vld [vmem:[#allocation8 + $0x28] sm:$0xff]   ;;  %v1699_v17 = vld [vmem:[#allocation8 + $0x70] sm:$0xff]  }
  0x4f   :  { %1471 = vmatmul.mubr.msk.bf16.vlgmr.msra.gmra.mrb[0].mxu1 %vm97_vm1, %v1684_v2  ;;  %v1700_v18 = vld [vmem:[#allocation8 + $0x30] sm:$0xff]   ;;  %v1701_v19 = vld [vmem:[#allocation8 + $0x78] sm:$0xff]   ;;  %v1703_v29 = vld [vmem:[#allocation8 + $0x80] sm:$0xff]   ;;  %p1854_p7 = por %p1853_p6, %p1852_p5 }
  0x50   :  { %1475 = vmatpush3.bf16.msra.mxu1 %v1685_v3  ;;  %1476 = vmatprep.mubr.msk.bf16.mxu1 %vm1884_vm0, %v1883_v0  ;;  %v1702_v20 = vld [vmem:[#allocation8 + $0x38] sm:$0xff]   ;;  %v1704_v32 = vld [vmem:[#allocation8 + $0x88] sm:$0xff]   ;;  %v1705_v33 = vld [vmem:[#allocation8 + $0x90] sm:$0xff]  }
  0x51   :  { %1500 = vmatprep.subr.bf16.mxu1 %v1883_v0  ;;  %1483 = vmatpush3.bf16.msra.mxu0 %v1689_v5  ;;  %v1706_v34 = vld [vmem:[#allocation8 + $0x98] sm:$0xff]   ;;  %v1707_v35 = vld [vmem:[#allocation8 + $0xa0] sm:$0xff]   ;;  %v1708_v36 = vld [vmem:[#allocation8 + $0xa8] sm:$0xff]   ;;  %p1855_p8 = pnand %p1854_p7, %p1848_p4 }
  0x52   :  { %1484 = vmatprep.subr.bf16.mxu0 %v1883_v0  ;;  %v1709_v37 = vld [vmem:[#allocation8 + $0xb0] sm:$0xff]   ;;  %v1710_v38 = vld [vmem:[#allocation8 + $0xb8] sm:$0xff]   ;;  %v1711_v42 = vld [vmem:[#allocation8 + $0xc0] sm:$0xff]  }
  0x53   :  { %v1712_v44 = vld [vmem:[#allocation8 + $0xc8] sm:$0xff]   ;;  %v1713_v45 = vld [vmem:[#allocation8 + $0xd0] sm:$0xff]   ;;  %v1714_v46 = vld [vmem:[#allocation8 + $0xd8] sm:$0xff]  }
  0x54   :  { %v1715_v47 = vld [vmem:[#allocation8 + $0xe0] sm:$0xff]   ;;  %v1716_v48 = vld [vmem:[#allocation8 + $0xe8] sm:$0xff]   ;;  %v1717_v49 = vld [vmem:[#allocation8 + $0xf0] sm:$0xff]  }
  0x55   :  { %1485 = vmatpush3.bf16.msra.mxu0 %v1691_v8  ;;  %v1718_v50 = vld [vmem:[#allocation8 + $0xf8] sm:$0xff]   ;;  %v1324_v58 = vld [vmem:[%s2142_s5] ss:$0 sm:$0xff] }
  0x56   :  { %1486 = vmatprep.subr.bf16.mxu0 %v1883_v0  ;;  %v1720_v8 = vld [vmem:[#allocation8 + $0x108] sm:$0xff]  }
  0x57   :  { %1477 = vmatmul.mubr.msk.bf16.vlgmr.msra.gmra.mrb[4].mxu1 %vm97_vm1, %v2012_v6 }
  0x58   :  { %1501 = vmatpush3.bf16.msra.mxu1 %v1688_v7  ;;  %1516 = vmatprep.mubr.msk.bf16.mxu1 %vm1884_vm0, %v1883_v0  ;;  %v1719_v7 = vld [vmem:[#allocation8 + $0x100] sm:$0xff]  }
  0x59   :  { %1502 = vmatprep.subr.bf16.mxu1 %v1883_v0  ;;  %1487 = vmatpush3.bf16.msra.mxu0 %v1693_v10  ;;  %v1722_v10 = vld [vmem:[#allocation8 + $0x118] sm:$0xff]  }
  0x5a   :  { %1488 = vmatprep.subr.bf16.mxu0 %v1883_v0 }
  0x5c   :  { %1503 = vmatpush3.bf16.msra.mxu1 %v1690_v9  ;;  %v1721_v9 = vld [vmem:[#allocation8 + $0x110] sm:$0xff]  }
  0x5d   :  { %1504 = vmatprep.subr.bf16.mxu1 %v1883_v0  ;;  %1489 = vmatpush3.bf16.msra.mxu0 %v1695_v12  ;;  %v1724_v12 = vld [vmem:[#allocation8 + $0x128] sm:$0xff]  }
  0x5e   :  { %1490 = vmatprep.subr.bf16.mxu0 %v1883_v0 }
  0x60   :  { %1505 = vmatpush3.bf16.msra.mxu1 %v1692_v11  ;;  %v1723_v11 = vld [vmem:[#allocation8 + $0x120] sm:$0xff]  }
  0x61   :  { %1506 = vmatprep.subr.bf16.mxu1 %v1883_v0  ;;  %1491 = vmatpush3.bf16.msra.mxu0 %v1697_v15 }
  0x62   :  { %1492 = vmatprep.subr.bf16.mxu0 %v1883_v0 }
  0x64   :  { %1507 = vmatpush3.bf16.msra.mxu1 %v1694_v13  ;;  %v1725_v13 = vld [vmem:[#allocation8 + $0x130] sm:$0xff]  }
  0x65   :  { %1508 = vmatprep.subr.bf16.mxu1 %v1883_v0  ;;  %1493 = vmatpush3.bf16.msra.mxu0 %v1699_v17 }
  0x66   :  { %1494 = vmatprep.subr.bf16.mxu0 %v1883_v0 }
  0x68   :  { %1509 = vmatpush3.bf16.msra.mxu1 %v1696_v14  ;;  %v1726_v14 = vld [vmem:[#allocation8 + $0x138] sm:$0xff]  }
  0x69   :  { %1510 = vmatprep.subr.bf16.mxu1 %v1883_v0  ;;  %1495 = vmatpush3.bf16.msra.mxu0 %v1701_v19 }
  0x6a   :  { %1520 = vmatprep.subr.bf16.mxu0 %v1883_v0 }
  0x6c   :  { %1511 = vmatpush3.bf16.msra.mxu1 %v1698_v16 }
  0x6d   :  { %1512 = vmatprep.subr.bf16.mxu1 %v1883_v0 }
  0x70   :  { %1513 = vmatpush3.bf16.msra.mxu1 %v1700_v18 }
  0x71   :  { %1514 = vmatprep.subr.bf16.mxu1 %v1883_v0 }
  0x74   :  { %1515 = vmatpush3.bf16.msra.mxu1 %v1702_v20 }
  0x75   :  { %1540 = vmatprep.subr.bf16.mxu1 %v1883_v0 }
  0x77   :  { %1517 = vmatmul.mubr.bf16.vlgmr.msra.gmra.mrb[8].mxu1 %v1685_v3 }
  0x78   :  { %1542 = vmatprep.mubr.msk.bf16.mxu1 %vm1884_vm0, %v1883_v0 }
 0x122   :  { %v135_v21 = vpop.f32.mrb[0].mxu1 }
 0x123   :  { %v1472_v22 = vpop.f32.mrb[1].mxu1 }
 0x124   :  { %v138_v23 = vpop.f32.mrb[2].mxu1  ;;  %v1727_v22 = vld [vmem:[#allocation8 + $0x140] sm:$0xff]  }
 0x125   :  { %v2035_v24 = vpack.c.bf16 %v138_v23, %v135_v21  ;;  %v1473_v25 = vpop.f32.mrb[3].mxu1 }
 0x12a   :  { %v193_v26 = vpop.f32.mrb[4].mxu1 }
 0x12b   :  { %v1478_v27 = vpop.f32.mrb[5].mxu1 }
 0x12c   :  { %v196_v28 = vpop.f32.mrb[6].mxu1  ;;  %v1729_v27 = vld [vmem:[#allocation8 + $0x150] sm:$0xff]  }
 0x12d   :  { %v200_v30 = vpack.c.bf16 %v196_v28, %v193_v26  ;;  %v1479_v31 = vpop.f32.mrb[7].mxu1  ;;  %v1728_v26 = vld [vmem:[#allocation8 + $0x148] sm:$0xff]   ;;  %v1730_v28 = vld [vmem:[#allocation8 + $0x158] sm:$0xff]  }
 0x12e   :  { %v1733_v31 = vld [vmem:[#allocation8 + $0x170] sm:$0xff]  }
 0x12f   :  { %1497 = vmatmul.mubr.bf16.vlgmr.msra.gmra.mrb[0].mxu0 %v200_v30  ;;  %v1732_v30 = vld [vmem:[#allocation8 + $0x168] sm:$0xff]  }
 0x130   :  { %1521 = vmatpush3.bf16.msra.mxu0 %v1703_v29  ;;  %1536 = vmatprep.mubr.msk.bf16.mxu0 %vm1884_vm0, %v1883_v0  ;;  %v1731_v29 = vld [vmem:[#allocation8 + $0x160] sm:$0xff]  }
 0x131   :  { %1522 = vmatprep.subr.bf16.mxu0 %v1883_v0 }
 0x134   :  { %1523 = vmatpush3.bf16.msra.mxu0 %v1704_v32  ;;  %v1734_v32 = vld [vmem:[#allocation8 + $0x178] sm:$0xff]  }
 0x135   :  { %1524 = vmatprep.subr.bf16.mxu0 %v1883_v0 }
 0x138   :  { %1525 = vmatpush3.bf16.msra.mxu0 %v1705_v33  ;;  %v1743_v33 = vld [vmem:[#allocation8 + $0x1c0] sm:$0xff]  }
 0x139   :  { %1526 = vmatprep.subr.bf16.mxu0 %v1883_v0 }
 0x13c   :  { %1527 = vmatpush3.bf16.msra.mxu0 %v1706_v34  ;;  %v1744_v34 = vld [vmem:[#allocation8 + $0x1c8] sm:$0xff]  }
 0x13d   :  { %1528 = vmatprep.subr.bf16.mxu0 %v1883_v0 }
 0x140   :  { %1529 = vmatpush3.bf16.msra.mxu0 %v1707_v35  ;;  %v1745_v35 = vld [vmem:[#allocation8 + $0x1d0] sm:$0xff]  }
 0x141   :  { %1530 = vmatprep.subr.bf16.mxu0 %v1883_v0 }
 0x144   :  { %1531 = vmatpush3.bf16.msra.mxu0 %v1708_v36  ;;  %v1746_v36 = vld [vmem:[#allocation8 + $0x1d8] sm:$0xff]  }
 0x145   :  { %1532 = vmatprep.subr.bf16.mxu0 %v1883_v0 }
 0x148   :  { %1533 = vmatpush3.bf16.msra.mxu0 %v1709_v37  ;;  %v1747_v37 = vld [vmem:[#allocation8 + $0x1e0] sm:$0xff]  }
 0x149   :  { %1534 = vmatprep.subr.bf16.mxu0 %v1883_v0 }
 0x14a   :  { %v420_v39 = vpop.f32.mrb[8].mxu1 }
 0x14b   :  { %v1518_v40 = vpop.f32.mrb[9].mxu1 }
 0x14c   :  { %1535 = vmatpush3.bf16.msra.mxu0 %v1710_v38  ;;  %v423_v41 = vpop.f32.mrb[10].mxu1  ;;  %v1748_v38 = vld [vmem:[#allocation8 + $0x1e8] sm:$0xff]  }
 0x14d   :  { %1566 = vmatprep.subr.bf16.mxu0 %v1883_v0  ;;  %v1519_v43 = vpop.f32.mrb[11].mxu1 }
 0x14f   :  { %1537 = vmatmul.mubr.bf16.vlgmr.msra.gmra.mrb[4].mxu0 %v2035_v24 }
 0x150   :  { %1582 = vmatprep.mubr.msk.bf16.mxu0 %vm1884_vm0, %v1883_v0  ;;  %1567 = vmatpush3.bf16.msra.mxu0 %v1711_v42 }
 0x151   :  { %1568 = vmatprep.subr.bf16.mxu0 %v1883_v0 }
 0x154   :  { %1569 = vmatpush3.bf16.msra.mxu0 %v1712_v44 }
 0x155   :  { %1570 = vmatprep.subr.bf16.mxu0 %v1883_v0 }
 0x158   :  { %1571 = vmatpush3.bf16.msra.mxu0 %v1713_v45 }
 0x159   :  { %1572 = vmatprep.subr.bf16.mxu0 %v1883_v0 }
 0x15c   :  { %1573 = vmatpush3.bf16.msra.mxu0 %v1714_v46 }
 0x15d   :  { %1574 = vmatprep.subr.bf16.mxu0 %v1883_v0 }
 0x160   :  { %1575 = vmatpush3.bf16.msra.mxu0 %v1715_v47  ;;  %v1351_v47 = vld [vmem:[%s2142_s5 + $0x1] ss:$0 sm:$0xff] }
 0x161   :  { %1576 = vmatprep.subr.bf16.mxu0 %v1883_v0 }
 0x164   :  { %1577 = vmatpush3.bf16.msra.mxu0 %v1716_v48 }
 0x165   :  { %1578 = vmatprep.subr.bf16.mxu0 %v1883_v0 }
 0x168   :  { %1579 = vmatpush3.bf16.msra.mxu0 %v1717_v49 }
 0x169   :  { %1580 = vmatprep.subr.bf16.mxu0 %v1883_v0 }
 0x16c   :  { %1581 = vmatpush3.bf16.msra.mxu0 %v1718_v50 }
 0x16d   :  { %1612 = vmatprep.subr.bf16.mxu0 %v1883_v0 }
 0x202   :  { %v331_v51 = vpop.f32.mrb[0].mxu0 }
 0x203   :  { %v421_v52 = vadd.f32 %v420_v39, %v331_v51  ;;  %v1498_v53 = vpop.f32.mrb[1].mxu0  ;;  %v1749_v39 = vld [vmem:[#allocation8 + $0x1f0] sm:$0xff]  }
 0x204   :  { %v334_v54 = vpop.f32.mrb[2].mxu0 }
 0x205   :  { %v424_v55 = vadd.f32 %v423_v41, %v334_v54  ;;  %v1499_v56 = vpop.f32.mrb[3].mxu0 }
 0x222   :  { %v509_v57 = vpop.f32.mrb[4].mxu0 }
 0x223   :  { %v516_v59 = vadd.f32 %v509_v57, %v421_v52  ;;  %v1538_v60 = vpop.f32.mrb[5].mxu0 }
 0x224   :  { %v512_v61 = vpop.f32.mrb[6].mxu0  ;;  %v1737_v60 = vld [vmem:[#allocation8 + $0x190] sm:$0xff]  }
 0x225   :  { %v525_v62 = vadd.f32 %v1324_v58, %v516_v59  ;;  %v517_v63 = vadd.f32 %v512_v61, %v424_v55  ;;  %v1539_v1 = vpop.f32.mrb[7].mxu0  ;;  %v1736_v59 = vld [vmem:[#allocation8 + $0x188] sm:$0xff]   ;;  %v1738_v61 = vld [vmem:[#allocation8 + $0x198] sm:$0xff]  }
 0x226   :  { %v1742_v1 = vld [vmem:[#allocation8 + $0x1b8] sm:$0xff]  }
 0x227   :  { %v526_v2 = vadd.f32 %v1324_v58, %v517_v63  ;;  %v527_v3 = vmax.f32 %v525_v62, 0.0  ;;  %v1735_v58 = vld [vmem:[#allocation8 + $0x180] sm:$0xff]   ;;  %v1741_v63 = vld [vmem:[#allocation8 + $0x1b0] sm:$0xff]  }
 0x228   :  { %v1739_v62 = vld [vmem:[#allocation8 + $0x1a0] sm:$0xff]  }
 0x229   :  { %v528_v4 = vmax.f32 %v526_v2, 0.0  ;;  %v1750_v2 = vld [vmem:[#allocation8 + $0x1f8] sm:$0xff]  }
 0x22b   :  { %v529_v5 = vpack.c.bf16 %v528_v4, %v527_v3 }
 0x22d   :  { %1541 = vmatpush3.bf16.msra.mxu1 %v529_v5  ;;  %1583 = vmatmul.mubr.bf16.vlgmr.msra.gmra.mrb[8].mxu0 %v529_v5 }
 0x22e   :  { %1546 = vmatprep.subr.bf16.mxu1 %v1883_v0  ;;  %1628 = vmatprep.mubr.msk.bf16.mxu0 %vm1884_vm0, %v1883_v0 }
 0x22f   :  { %1613 = vmatpush3.bf16.msra.mxu0 %v1743_v33 }
 0x230   :  { %1543 = vmatmul.mubr.msk.bf16.vlgmr.msra.gmra.mrb[12].mxu1 %vm97_vm1, %v2012_v6  ;;  %1614 = vmatprep.subr.bf16.mxu0 %v1883_v0 }
 0x231   :  { %1547 = vmatpush3.bf16.msra.mxu1 %v1719_v7  ;;  %1562 = vmatprep.mubr.msk.bf16.mxu1 %vm1884_vm0, %v1883_v0  ;;  %v1751_v7 = vld [vmem:[#allocation8 + $0x200] sm:$0xff]  }
 0x232   :  { %1548 = vmatprep.subr.bf16.mxu1 %v1883_v0 }
 0x233   :  { %1615 = vmatpush3.bf16.msra.mxu0 %v1744_v34 }
 0x234   :  { %1616 = vmatprep.subr.bf16.mxu0 %v1883_v0 }
 0x235   :  { %1549 = vmatpush3.bf16.msra.mxu1 %v1720_v8 }
 0x236   :  { %1550 = vmatprep.subr.bf16.mxu1 %v1883_v0 }
 0x237   :  { %1617 = vmatpush3.bf16.msra.mxu0 %v1745_v35 }
 0x238   :  { %1618 = vmatprep.subr.bf16.mxu0 %v1883_v0 }
 0x239   :  { %1551 = vmatpush3.bf16.msra.mxu1 %v1721_v9 }
 0x23a   :  { %1552 = vmatprep.subr.bf16.mxu1 %v1883_v0 }
 0x23b   :  { %1619 = vmatpush3.bf16.msra.mxu0 %v1746_v36 }
 0x23c   :  { %1620 = vmatprep.subr.bf16.mxu0 %v1883_v0 }
 0x23d   :  { %1553 = vmatpush3.bf16.msra.mxu1 %v1722_v10  ;;  %v1752_v10 = vld [vmem:[#allocation8 + $0x208] sm:$0xff]  }
 0x23e   :  { %1554 = vmatprep.subr.bf16.mxu1 %v1883_v0 }
 0x23f   :  { %1621 = vmatpush3.bf16.msra.mxu0 %v1747_v37 }
 0x240   :  { %1622 = vmatprep.subr.bf16.mxu0 %v1883_v0 }
 0x241   :  { %1555 = vmatpush3.bf16.msra.mxu1 %v1723_v11  ;;  %v1753_v11 = vld [vmem:[#allocation8 + $0x210] sm:$0xff]  }
 0x242   :  { %1556 = vmatprep.subr.bf16.mxu1 %v1883_v0 }
 0x243   :  { %1623 = vmatpush3.bf16.msra.mxu0 %v1748_v38 }
 0x244   :  { %1624 = vmatprep.subr.bf16.mxu0 %v1883_v0 }
 0x245   :  { %1557 = vmatpush3.bf16.msra.mxu1 %v1724_v12  ;;  %v1754_v12 = vld [vmem:[#allocation8 + $0x218] sm:$0xff]  }
 0x246   :  { %1558 = vmatprep.subr.bf16.mxu1 %v1883_v0 }
 0x247   :  { %1625 = vmatpush3.bf16.msra.mxu0 %v1749_v39 }
 0x248   :  { %1626 = vmatprep.subr.bf16.mxu0 %v1883_v0 }
 0x249   :  { %1559 = vmatpush3.bf16.msra.mxu1 %v1725_v13  ;;  %v1755_v13 = vld [vmem:[#allocation8 + $0x220] sm:$0xff]  }
 0x24a   :  { %1560 = vmatprep.subr.bf16.mxu1 %v1883_v0 }
 0x24b   :  { %1627 = vmatpush3.bf16.msra.mxu0 %v1750_v2 }
 0x24c   :  { %1652 = vmatprep.subr.bf16.mxu0 %v1883_v0 }
 0x24d   :  { %1561 = vmatpush3.bf16.msra.mxu1 %v1726_v14  ;;  %v1756_v14 = vld [vmem:[#allocation8 + $0x228] sm:$0xff]  }
 0x24e   :  { %1586 = vmatprep.subr.bf16.mxu1 %v1883_v0 }
 0x300   :  { %v792_v15 = vpop.f32.mrb[8].mxu0 }
 0x301   :  { %v1584_v16 = vpop.f32.mrb[9].mxu0 }
 0x302   :  { %v795_v17 = vpop.f32.mrb[10].mxu0  ;;  %v1758_v16 = vld [vmem:[#allocation8 + $0x238] sm:$0xff]  }
 0x303   :  { %v564_v18 = vpop.f32.mrb[12].mxu1  ;;  %v1585_v19 = vpop.f32.mrb[11].mxu0 }
 0x304   :  { %v1544_v20 = vpop.f32.mrb[13].mxu1 }
 0x305   :  { %v567_v21 = vpop.f32.mrb[14].mxu1 }
 0x306   :  { %v571_v23 = vpack.c.bf16 %v567_v21, %v564_v18  ;;  %v1545_v25 = vpop.f32.mrb[15].mxu1 }
 0x308   :  { %1563 = vmatmul.mubr.bf16.vlgmr.msra.gmra.mrb[16].mxu1 %v571_v23 }
 0x309   :  { %1587 = vmatpush3.bf16.msra.mxu1 %v1727_v22  ;;  %1602 = vmatprep.mubr.msk.bf16.mxu1 %vm1884_vm0, %v1883_v0 }
 0x30a   :  { %1588 = vmatprep.subr.bf16.mxu1 %v1883_v0 }
 0x30d   :  { %1589 = vmatpush3.bf16.msra.mxu1 %v1728_v26 }
 0x30e   :  { %1590 = vmatprep.subr.bf16.mxu1 %v1883_v0 }
 0x311   :  { %1591 = vmatpush3.bf16.msra.mxu1 %v1729_v27 }
 0x312   :  { %1592 = vmatprep.subr.bf16.mxu1 %v1883_v0 }
 0x315   :  { %1593 = vmatpush3.bf16.msra.mxu1 %v1730_v28 }
 0x316   :  { %1594 = vmatprep.subr.bf16.mxu1 %v1883_v0 }
 0x319   :  { %1595 = vmatpush3.bf16.msra.mxu1 %v1731_v29  ;;  %v1378_v29 = vld [vmem:[%s2142_s5 + $0x2] ss:$0 sm:$0xff] }
 0x31a   :  { %1596 = vmatprep.subr.bf16.mxu1 %v1883_v0 }
 0x31d   :  { %1597 = vmatpush3.bf16.msra.mxu1 %v1732_v30 }
 0x31e   :  { %1598 = vmatprep.subr.bf16.mxu1 %v1883_v0 }
 0x321   :  { %1599 = vmatpush3.bf16.msra.mxu1 %v1733_v31 }
 0x322   :  { %1600 = vmatprep.subr.bf16.mxu1 %v1883_v0 }
 0x325   :  { %1601 = vmatpush3.bf16.msra.mxu1 %v1734_v32 }
 0x326   :  { %1606 = vmatprep.subr.bf16.mxu1 %v1883_v0 }
 0x328   :  { %1603 = vmatmul.mubr.bf16.vlgmr.msra.gmra.mrb[20].mxu1 %v2035_v24 }
 0x329   :  { %1608 = vmatprep.mubr.msk.bf16.mxu1 %vm1884_vm0, %v1883_v0 }
 0x3db   :  { %v703_v40 = vpop.f32.mrb[16].mxu1 }
 0x3dc   :  { %v793_v41 = vadd.f32 %v792_v15, %v703_v40  ;;  %v1564_v42 = vpop.f32.mrb[17].mxu1  ;;  %v1757_v15 = vld [vmem:[#allocation8 + $0x230] sm:$0xff]  }
 0x3dd   :  { %v706_v43 = vpop.f32.mrb[18].mxu1 }
 0x3de   :  { %v796_v44 = vadd.f32 %v795_v17, %v706_v43  ;;  %v1565_v45 = vpop.f32.mrb[19].mxu1 }
 0x3fb   :  { %v881_v46 = vpop.f32.mrb[20].mxu1 }
 0x3fc   :  { %v888_v48 = vadd.f32 %v881_v46, %v793_v41  ;;  %v1604_v49 = vpop.f32.mrb[21].mxu1 }
 0x3fd   :  { %v884_v50 = vpop.f32.mrb[22].mxu1 }
 0x3fe   :  { %v898_v51 = vadd.f32 %v1351_v47, %v888_v48  ;;  %v889_v52 = vadd.f32 %v884_v50, %v796_v44  ;;  %v1605_v53 = vpop.f32.mrb[23].mxu1 }
 0x400   :  { %v899_v54 = vadd.f32 %v1351_v47, %v889_v52  ;;  %v900_v55 = vmax.f32 %v898_v51, 0.0 }
 0x402   :  { %v901_v56 = vmax.f32 %v899_v54, 0.0 }
 0x404   :  { %v902_v57 = vpack.c.bf16 %v901_v56, %v900_v55 }
 0x406   :  { %1607 = vmatpush3.bf16.msra.mxu1 %v902_v57 }
 0x407   :  { %1632 = vmatprep.subr.bf16.mxu1 %v1883_v0 }
 0x409   :  { %1609 = vmatmul.mubr.msk.bf16.vlgmr.msra.gmra.mrb[24].mxu1 %vm97_vm1, %v2012_v6  ;;  %v1740_v6 = vld [vmem:[#allocation8 + $0x1a8] sm:$0xff]  }
 0x40a   :  { %1633 = vmatpush3.bf16.msra.mxu1 %v1735_v58  ;;  %1648 = vmatprep.mubr.msk.bf16.mxu1 %vm1884_vm0, %v1883_v0 }
 0x40b   :  { %1634 = vmatprep.subr.bf16.mxu1 %v1883_v0 }
 0x40e   :  { %1635 = vmatpush3.bf16.msra.mxu1 %v1736_v59 }
 0x40f   :  { %1636 = vmatprep.subr.bf16.mxu1 %v1883_v0 }
 0x412   :  { %1637 = vmatpush3.bf16.msra.mxu1 %v1737_v60 }
 0x413   :  { %1638 = vmatprep.subr.bf16.mxu1 %v1883_v0 }
 0x416   :  { %1639 = vmatpush3.bf16.msra.mxu1 %v1738_v61 }
 0x417   :  { %1640 = vmatprep.subr.bf16.mxu1 %v1883_v0 }
 0x41a   :  { %1641 = vmatpush3.bf16.msra.mxu1 %v1739_v62 }
 0x41b   :  { %1642 = vmatprep.subr.bf16.mxu1 %v1883_v0 }
 0x41e   :  { %1643 = vmatpush3.bf16.msra.mxu1 %v1740_v6 }
 0x41f   :  { %1644 = vmatprep.subr.bf16.mxu1 %v1883_v0 }
 0x422   :  { %1645 = vmatpush3.bf16.msra.mxu1 %v1741_v63 }
 0x423   :  { %1646 = vmatprep.subr.bf16.mxu1 %v1883_v0 }
 0x426   :  { %1647 = vmatpush3.bf16.msra.mxu1 %v1742_v1 }
 0x429   :  { %1649 = vmatmul.mubr.bf16.vlgmr.msra.gmra.mrb[28].mxu1 %v902_v57 }
 0x4dc   :  { %v937_v3 = vpop.f32.mrb[24].mxu1 }
 0x4dd   :  { %v1610_v4 = vpop.f32.mrb[25].mxu1 }
 0x4de   :  { %v940_v5 = vpop.f32.mrb[26].mxu1 }
 0x4df   :  { %v944_v8 = vpack.c.bf16 %v940_v5, %v937_v3  ;;  %v1611_v9 = vpop.f32.mrb[27].mxu1 }
 0x4e1   :  { %1629 = vmatmul.mubr.bf16.vlgmr.msra.gmra.mrb[12].mxu0 %v944_v8 }
 0x4e2   :  { %1653 = vmatpush3.bf16.msra.mxu0 %v1751_v7  ;;  %1668 = vmatprep.mubr.msk.bf16.mxu0 %vm1884_vm0, %v1883_v0 }
 0x4e3   :  { %1654 = vmatprep.subr.bf16.mxu0 %v1883_v0 }
 0x4e6   :  { %1655 = vmatpush3.bf16.msra.mxu0 %v1752_v10 }
 0x4e7   :  { %1656 = vmatprep.subr.bf16.mxu0 %v1883_v0 }
 0x4ea   :  { %1657 = vmatpush3.bf16.msra.mxu0 %v1753_v11 }
 0x4eb   :  { %1658 = vmatprep.subr.bf16.mxu0 %v1883_v0 }
 0x4ee   :  { %1659 = vmatpush3.bf16.msra.mxu0 %v1754_v12 }
 0x4ef   :  { %1660 = vmatprep.subr.bf16.mxu0 %v1883_v0 }
 0x4f2   :  { %1661 = vmatpush3.bf16.msra.mxu0 %v1755_v13 }
 0x4f3   :  { %1662 = vmatprep.subr.bf16.mxu0 %v1883_v0 }
 0x4f6   :  { %1663 = vmatpush3.bf16.msra.mxu0 %v1756_v14 }
 0x4f7   :  { %1664 = vmatprep.subr.bf16.mxu0 %v1883_v0 }
 0x4fa   :  { %1665 = vmatpush3.bf16.msra.mxu0 %v1757_v15 }
 0x4fb   :  { %1666 = vmatprep.subr.bf16.mxu0 %v1883_v0 }
 0x4fc   :  { %v1165_v17 = vpop.f32.mrb[28].mxu1 }
 0x4fd   :  { %v1650_v18 = vpop.f32.mrb[29].mxu1 }
 0x4fe   :  { %1667 = vmatpush3.bf16.msra.mxu0 %v1758_v16  ;;  %v1168_v19 = vpop.f32.mrb[30].mxu1 }
 0x4ff   :  { %v1651_v20 = vpop.f32.mrb[31].mxu1 }
 0x501   :  { %1669 = vmatmul.mubr.bf16.vlgmr.msra.gmra.mrb[16].mxu0 %v2035_v24 }
 0x5b4   :  { %v1076_v21 = vpop.f32.mrb[12].mxu0 }
 0x5b5   :  { %v1166_v22 = vadd.f32 %v1165_v17, %v1076_v21  ;;  %v1630_v23 = vpop.f32.mrb[13].mxu0 }
 0x5b6   :  { %v1079_v25 = vpop.f32.mrb[14].mxu0 }
 0x5b7   :  { %v1169_v26 = vadd.f32 %v1168_v19, %v1079_v25  ;;  %v1631_v27 = vpop.f32.mrb[15].mxu0 }
 0x5d4   :  { %v1254_v28 = vpop.f32.mrb[16].mxu0 }
 0x5d5   :  { %v1261_v30 = vadd.f32 %v1254_v28, %v1166_v22  ;;  %v1670_v0 = vpop.f32.mrb[17].mxu0 }
 0x5d6   :  { %v1257_v31 = vpop.f32.mrb[18].mxu0 }
 0x5d7   :  { %v1271_v32 = vadd.f32 %v1378_v29, %v1261_v30  ;;  %v1262_v33 = vadd.f32 %v1257_v31, %v1169_v26  ;;  %v1671_v34 = vpop.f32.mrb[19].mxu0 }
 0x5d9   :  { %1273 = vst [vmem:[#allocation10] sm:$0xff] %v1271_v32  ;;  %v1272_v24 = vadd.f32 %v1378_v29, %v1262_v33 }
 0x5db   :  { %1274 = vst [vmem:[#allocation10 + $0x8] sm:$0xff] %v1272_v24 }
 0x5dc   :  { %1858 = shalt.err (!%p1855_p8)
}
 0x5dd   :  { %s1859_s30 = scalar_lea.hbm %s2143_s6, 256 }
 0x5de   :  { %p1860_p9 = scmp.ne.s32.totalorder %s2143_s6, %s1859_s30  ;;  %p1863_p10 = scmp.lt.u32.totalorder %s1859_s30, %s2143_s6 }
 0x5e0   :  { %p1865_p11 = pnand %p1863_p10, %p1860_p9 }
 0x5e2   :  { %1868 = shalt.err (!%p1865_p11)
}
 0x5e3   :  { %s1886_s24 = smov 128   ;;  %s1887_s12 = smov 8  }
 0x5e4   :  { %1286 = dma.vmem_to_hbm [thread:$0]  %s1281_s27, 256, %s2143_s6, [#allocation4], %s1886_s24, %s1886_s24, %s1887_s12  }
 0x5e5   :  { %1875 = dma.done.wait [#allocation4], 256  }
 0x5e6   :  { %1876 = vsyncadd [#allocation4], 4294967040 }
 0x5e7   :  { %1290 = vsyncpa [#allocation3], 1 }
 0x5e8   :  { %1291 = vsyncpa [#allocation6], 1 }
 0x5e9   :  { %1292 = vsyncpa [#allocation9], 1 }
 0x5ea   :  { %1293 = vsyncpa [#allocation4], 1 }

</bundles_post_ra>
